<compile_context>
chip_gen: v7x
topology: tpu7x:2x2x1
jax: 0.10.0
libtpu: 0.0.40
codegen_flags: <defaults>
</compile_context>

<pallas_src>
import jax
import jax.numpy as jnp
from jax import lax
from jax.experimental import pallas as pl
from jax.experimental.pallas import tpu as pltpu


def tristounet_kernel(x_ref, wih_ref, whh_ref, b_ref,
                      w1_ref, b1_ref, w2_ref, b2_ref, out_ref):
    """Forward pass for one batch tile, fully resident in VMEM.

    x_ref  : (T, Bb, F)  bf16 time-major input block
    wih_ref: (F, 4H)     bf16 fused input->hidden weights (gate order i,f,g,o;
                         i/f/o columns pre-scaled by 0.5)
    whh_ref: (H, 4H)     bf16 fused hidden->hidden weights (same pre-scale)
    b_ref  : (1, 4H)     f32 fused bias (b_ih + b_hh, same pre-scale)
    w1_ref : (H, L1) bf16, b1_ref: (1, L1) f32   first linear layer
    w2_ref : (L1, L2) bf16, b2_ref: (1, L2) f32  second linear layer
    out_ref: (Bb, L2)    f32 L2-normalized embeddings for this batch block
    """
    T, Bb, F = x_ref.shape
    H = whh_ref.shape[0]
    G = whh_ref.shape[1]          # 4H

    # ---- Hoisted input projection (off the serial critical path) ----------
    # One (T*Bb, F) @ (F, 4H) matmul, bias folded in, kept as a single
    # concatenated (T, Bb, 4H) buffer.
    x2d = x_ref[...].reshape(T * Bb, F)
    xg = (jnp.dot(x2d, wih_ref[...], preferred_element_type=jnp.float32)
          + b_ref[...]).reshape(T, Bb, G)

    whh = whh_ref[...]            # bf16 (H, 4H), identical RHS for all steps

    h = jnp.zeros((Bb, H), jnp.float32)
    c = jnp.zeros((Bb, H), jnp.float32)
    pooled = jnp.zeros((Bb, H), jnp.float32)

    # ---- Serial LSTM recurrence, fully unrolled (T static & small) --------
    for t in range(T):
        if t == 0:
            z = xg[0]                                   # h == 0: skip the dot
        else:
            # accumulate form: add folds into MXU result accumulate on v7x
            z = xg[t] + jnp.dot(h.astype(whh.dtype), whh,
                                preferred_element_type=jnp.float32)
        # Single tanh over the full 4H-lane gate slab; sigmoid gates were
        # pre-scaled by 0.5 so sigmoid(g) = 0.5*tanh(g/2) + 0.5.
        s = jnp.tanh(z)
        i_g = 0.5 * s[:, 0 * H:1 * H] + 0.5
        f_g = 0.5 * s[:, 1 * H:2 * H] + 0.5
        g_g = s[:, 2 * H:3 * H]
        o_g = 0.5 * s[:, 3 * H:4 * H] + 0.5
        c = f_g * c + i_g * g_g
        h = o_g * jnp.tanh(c)
        pooled = pooled + h                             # temporal 'sum' pool

    # ---- MLP head: Linear -> tanh -> Linear -> tanh ------------------------
    y = jnp.tanh(jnp.dot(pooled.astype(w1_ref.dtype), w1_ref[...],
                         preferred_element_type=jnp.float32) + b1_ref[...])
    y = jnp.tanh(jnp.dot(y.astype(w2_ref.dtype), w2_ref[...],
                         preferred_element_type=jnp.float32) + b2_ref[...])

    # ---- L2 normalize (rsqrt -> EUP slot; matches torch.norm(...,2,1)) -----
    inv_norm = lax.rsqrt(jnp.sum(y * y, axis=-1, keepdims=True))
    out_ref[...] = y * inv_norm


def tristounet_forward(x, params, *, block_b=256, matmul_dtype=jnp.bfloat16):
    """x: (B, T, F) batch-first, as in the PyTorch module (batch_first=True).

    params = (wih (F,4H), whh (H,4H), b (1,4H)=b_ih+b_hh, w1, b1, w2, b2),
    PyTorch gate order (i, f, g, o), all f32.
    """
    wih, whh, b, w1, b1, w2, b2 = params
    B, T, F = x.shape
    H = whh.shape[0]
    L1 = w1.shape[1]
    L2 = w2.shape[1]

    # Fold sigmoid into tanh: pre-scale the i/f/o gate columns by 0.5.
    gate_scale = jnp.concatenate([
        jnp.full((H,), 0.5, jnp.float32),   # i
        jnp.full((H,), 0.5, jnp.float32),   # f
        jnp.ones((H,), jnp.float32),        # g (tanh gate, unscaled)
        jnp.full((H,), 0.5, jnp.float32),   # o
    ])[None, :]
    wih_s = wih * gate_scale
    whh_s = whh * gate_scale
    b_s = (b * gate_scale).astype(jnp.float32)

    # Time-major input so each recurrence step reads one clean (Bb, 4H) tile.
    x_tm = jnp.transpose(x, (1, 0, 2))

    # bf16 matmul operands, f32 accumulation; elementwise math stays f32.
    x_tm = x_tm.astype(matmul_dtype)
    wih_s = wih_s.astype(matmul_dtype)
    whh_s = whh_s.astype(matmul_dtype)
    w1_c = w1.astype(matmul_dtype)
    w2_c = w2.astype(matmul_dtype)
    b1_c = b1.astype(jnp.float32)
    b2_c = b2.astype(jnp.float32)

    args = (x_tm, wih_s, whh_s, b_s, w1_c, b1_c, w2_c, b2_c)
    out_shape = jax.ShapeDtypeStruct((B, L2), jnp.float32)

    block_b = min(block_b, B)
    if block_b >= B:
        # Small batch: single invocation, no grid, everything in VMEM.
        return pl.pallas_call(tristounet_kernel, out_shape=out_shape)(*args)

    # Large batch: tile the batch with a "parallel" grid axis (fills the MXU
    # M dimension per push; shards across the 2 TensorCores on v7x).
    assert B % block_b == 0, "batch must be a multiple of the batch block"
    grid = (B // block_b,)
    return pl.pallas_call(
        tristounet_kernel,
        out_shape=out_shape,
        grid=grid,
        in_specs=[
            pl.BlockSpec((T, block_b, F), lambda i: (0, i, 0)),   # x (time-major)
            pl.BlockSpec((F, 4 * H), lambda i: (0, 0)),           # W_ih fused
            pl.BlockSpec((H, 4 * H), lambda i: (0, 0)),           # W_hh fused
            pl.BlockSpec((1, 4 * H), lambda i: (0, 0)),           # bias fused
            pl.BlockSpec((H, L1), lambda i: (0, 0)),               # linear 1
            pl.BlockSpec((1, L1), lambda i: (0, 0)),
            pl.BlockSpec((L1, L2), lambda i: (0, 0)),               # linear 2
            pl.BlockSpec((1, L2), lambda i: (0, 0)),
        ],
        out_specs=pl.BlockSpec((block_b, L2), lambda i: (i, 0)),
        compiler_params=pltpu.CompilerParams(
            dimension_semantics=("parallel",)),
    )(*args)


def reference_forward(x, params):
    """Pure-JAX f32 reference mirroring the PyTorch forward."""
    wih, whh, b, w1, b1, w2, b2 = params
    B, T, F = x.shape
    H = whh.shape[0]

    def step(carry, x_t):
        h, c = carry
        gates = x_t @ wih + h @ whh + b[0]
        i_g = jax.nn.sigmoid(gates[:, 0 * H:1 * H])
        f_g = jax.nn.sigmoid(gates[:, 1 * H:2 * H])
        g_g = jnp.tanh(gates[:, 2 * H:3 * H])
        o_g = jax.nn.sigmoid(gates[:, 3 * H:4 * H])
        c = f_g * c + i_g * g_g
        h = o_g * jnp.tanh(c)
        return (h, c), h

    zeros = jnp.zeros((B, H), jnp.float32)
    _, hs = lax.scan(step, (zeros, zeros), jnp.transpose(x, (1, 0, 2)))
    pooled = hs.sum(axis=0)
    y = jnp.tanh(pooled @ w1 + b1[0])
    y = jnp.tanh(y @ w2 + b2[0])
    return y / jnp.linalg.norm(y, axis=-1, keepdims=True)


def init_params(key, n_features, hidden, linear_dims):
    """Deterministic synthetic parameters (PyTorch gate order i, f, g, o)."""
    k = jax.random.split(key, 7)
    scale = 0.2
    wih = scale * jax.random.normal(k[0], (n_features, 4 * hidden), jnp.float32)
    whh = scale * jax.random.normal(k[1], (hidden, 4 * hidden), jnp.float32)
    b = scale * jax.random.normal(k[2], (1, 4 * hidden), jnp.float32)  # b_ih+b_hh
    l1, l2 = linear_dims
    w1 = scale * jax.random.normal(k[3], (hidden, l1), jnp.float32)
    b1 = scale * jax.random.normal(k[4], (1, l1), jnp.float32)
    w2 = scale * jax.random.normal(k[5], (l1, l2), jnp.float32)
    b2 = scale * jax.random.normal(k[6], (1, l2), jnp.float32)
    return (wih, whh, b, w1, b1, w2, b2)


if __name__ == "__main__":
    # Default module config: n_features=4, recurrent=[16], bidirectional=False,
    # pooling='sum', linear=[16, 16].  B=16 -> single kernel invocation, no grid.
    B, T, Fdim, H = 16, 8, 4, 16
    linear_dims = (16, 16)

    key = jax.random.PRNGKey(0)
    kx, kp = jax.random.split(key)
    x = jax.random.normal(kx, (B, T, Fdim), jnp.float32)
    params = init_params(kp, Fdim, H, linear_dims)

    out = tristounet_forward(x, params)
    out = jax.block_until_ready(out)

    ref = reference_forward(x, params)
    assert out.shape == (B, linear_dims[-1])
    # bf16 matmul operands (f32 accumulation) through an 8-step recurrence
    # need a looser tolerance than pure-f32.
    assert jnp.allclose(out, ref, rtol=3e-2, atol=3e-2), "mismatch vs reference"

    print("KERNEL_OK")
</pallas_src>

<mosaic_0001>
module attributes {stable_mosaic.version = 11 : i64} {
  func.func @tristounet_kernel(%arg0: memref<8x16x4xbf16, #tpu.memory_space<vmem>>, %arg1: memref<4x64xbf16, #tpu.memory_space<vmem>>, %arg2: memref<16x64xbf16, #tpu.memory_space<vmem>>, %arg3: memref<1x64xf32, #tpu.memory_space<vmem>>, %arg4: memref<16x16xbf16, #tpu.memory_space<vmem>>, %arg5: memref<1x16xf32, #tpu.memory_space<vmem>>, %arg6: memref<16x16xbf16, #tpu.memory_space<vmem>>, %arg7: memref<1x16xf32, #tpu.memory_space<vmem>>, %arg8: memref<16x16xf32, #tpu.memory_space<vmem>>) attributes {dimension_semantics = [], scalar_prefetch = 0 : i64, scratch_operands = 0 : i64, tpu.core_type = #tpu.core_type<tc>} {
    %c0 = arith.constant 0 : index
    %c0_0 = arith.constant 0 : index
    %c0_1 = arith.constant 0 : index
    %0 = vector.load %arg0[%c0, %c0_0, %c0_1] : memref<8x16x4xbf16, #tpu.memory_space<vmem>>, vector<8x16x4xbf16>
    %1 = vector.shape_cast %0 : vector<8x16x4xbf16> to vector<128x4xbf16>
    %c0_2 = arith.constant 0 : index
    %c0_3 = arith.constant 0 : index
    %2 = vector.load %arg1[%c0_2, %c0_3] : memref<4x64xbf16, #tpu.memory_space<vmem>>, vector<4x64xbf16>
    %cst = arith.constant dense<0.000000e+00> : vector<128x64xf32>
    %3 = tpu.matmul %1, %2, %cst {dimension_numbers = #tpu.dot_dimension_numbers<[1], [0], [0], [1], [0, 0, 1, 1], [], []>} : vector<128x4xbf16>, vector<4x64xbf16>, vector<128x64xf32> -> vector<128x64xf32>
    %c0_4 = arith.constant 0 : index
    %c0_5 = arith.constant 0 : index
    %4 = vector.load %arg3[%c0_4, %c0_5] : memref<1x64xf32, #tpu.memory_space<vmem>>, vector<1x64xf32>
    %5 = vector.broadcast %4 : vector<1x64xf32> to vector<128x64xf32>
    %6 = arith.addf %3, %5 : vector<128x64xf32>
    %7 = vector.shape_cast %6 : vector<128x64xf32> to vector<8x16x64xf32>
    %c0_6 = arith.constant 0 : index
    %c0_7 = arith.constant 0 : index
    %8 = vector.load %arg2[%c0_6, %c0_7] : memref<16x64xbf16, #tpu.memory_space<vmem>>, vector<16x64xbf16>
    %cst_8 = arith.constant 0.000000e+00 : f32
    %9 = vector.broadcast %cst_8 : f32 to vector<16x16xf32>
    %cst_9 = arith.constant 0.000000e+00 : f32
    %10 = vector.broadcast %cst_9 : f32 to vector<16x16xf32>
    %11 = vector.extract_strided_slice %7 {offsets = [0, 0, 0], sizes = [1, 16, 64], strides = [1, 1, 1]} : vector<8x16x64xf32> to vector<1x16x64xf32>
    %12 = vector.shape_cast %11 : vector<1x16x64xf32> to vector<16x64xf32>
    %13 = math.tanh %12 : vector<16x64xf32>
    %14 = vector.extract_strided_slice %13 {offsets = [0, 0], sizes = [16, 16], strides = [1, 1]} : vector<16x64xf32> to vector<16x16xf32>
    %cst_10 = arith.constant 5.000000e-01 : f32
    %15 = vector.broadcast %cst_10 : f32 to vector<16x16xf32>
    %16 = arith.mulf %15, %14 : vector<16x16xf32>
    %cst_11 = arith.constant 5.000000e-01 : f32
    %17 = vector.broadcast %cst_11 : f32 to vector<16x16xf32>
    %18 = arith.addf %16, %17 : vector<16x16xf32>
    %19 = vector.extract_strided_slice %13 {offsets = [0, 16], sizes = [16, 16], strides = [1, 1]} : vector<16x64xf32> to vector<16x16xf32>
    %cst_12 = arith.constant 5.000000e-01 : f32
    %20 = vector.broadcast %cst_12 : f32 to vector<16x16xf32>
    %21 = arith.mulf %20, %19 : vector<16x16xf32>
    %cst_13 = arith.constant 5.000000e-01 : f32
    %22 = vector.broadcast %cst_13 : f32 to vector<16x16xf32>
    %23 = arith.addf %21, %22 : vector<16x16xf32>
    %24 = vector.extract_strided_slice %13 {offsets = [0, 32], sizes = [16, 16], strides = [1, 1]} : vector<16x64xf32> to vector<16x16xf32>
    %25 = vector.extract_strided_slice %13 {offsets = [0, 48], sizes = [16, 16], strides = [1, 1]} : vector<16x64xf32> to vector<16x16xf32>
    %cst_14 = arith.constant 5.000000e-01 : f32
    %26 = vector.broadcast %cst_14 : f32 to vector<16x16xf32>
    %27 = arith.mulf %26, %25 : vector<16x16xf32>
    %cst_15 = arith.constant 5.000000e-01 : f32
    %28 = vector.broadcast %cst_15 : f32 to vector<16x16xf32>
    %29 = arith.addf %27, %28 : vector<16x16xf32>
    %30 = arith.mulf %23, %9 : vector<16x16xf32>
    %31 = arith.mulf %18, %24 : vector<16x16xf32>
    %32 = arith.addf %30, %31 : vector<16x16xf32>
    %33 = math.tanh %32 : vector<16x16xf32>
    %34 = arith.mulf %29, %33 : vector<16x16xf32>
    %35 = arith.addf %10, %34 : vector<16x16xf32>
    %36 = vector.extract_strided_slice %7 {offsets = [1, 0, 0], sizes = [1, 16, 64], strides = [1, 1, 1]} : vector<8x16x64xf32> to vector<1x16x64xf32>
    %37 = vector.shape_cast %36 : vector<1x16x64xf32> to vector<16x64xf32>
    %38 = arith.truncf %34 : vector<16x16xf32> to vector<16x16xbf16>
    %cst_16 = arith.constant dense<0.000000e+00> : vector<16x64xf32>
    %39 = tpu.matmul %38, %8, %cst_16 {dimension_numbers = #tpu.dot_dimension_numbers<[1], [0], [0], [1], [0, 0, 1, 1], [], []>} : vector<16x16xbf16>, vector<16x64xbf16>, vector<16x64xf32> -> vector<16x64xf32>
    %40 = arith.addf %37, %39 : vector<16x64xf32>
    %41 = math.tanh %40 : vector<16x64xf32>
    %42 = vector.extract_strided_slice %41 {offsets = [0, 0], sizes = [16, 16], strides = [1, 1]} : vector<16x64xf32> to vector<16x16xf32>
    %cst_17 = arith.constant 5.000000e-01 : f32
    %43 = vector.broadcast %cst_17 : f32 to vector<16x16xf32>
    %44 = arith.mulf %43, %42 : vector<16x16xf32>
    %cst_18 = arith.constant 5.000000e-01 : f32
    %45 = vector.broadcast %cst_18 : f32 to vector<16x16xf32>
    %46 = arith.addf %44, %45 : vector<16x16xf32>
    %47 = vector.extract_strided_slice %41 {offsets = [0, 16], sizes = [16, 16], strides = [1, 1]} : vector<16x64xf32> to vector<16x16xf32>
    %cst_19 = arith.constant 5.000000e-01 : f32
    %48 = vector.broadcast %cst_19 : f32 to vector<16x16xf32>
    %49 = arith.mulf %48, %47 : vector<16x16xf32>
    %cst_20 = arith.constant 5.000000e-01 : f32
    %50 = vector.broadcast %cst_20 : f32 to vector<16x16xf32>
    %51 = arith.addf %49, %50 : vector<16x16xf32>
    %52 = vector.extract_strided_slice %41 {offsets = [0, 32], sizes = [16, 16], strides = [1, 1]} : vector<16x64xf32> to vector<16x16xf32>
    %53 = vector.extract_strided_slice %41 {offsets = [0, 48], sizes = [16, 16], strides = [1, 1]} : vector<16x64xf32> to vector<16x16xf32>
    %cst_21 = arith.constant 5.000000e-01 : f32
    %54 = vector.broadcast %cst_21 : f32 to vector<16x16xf32>
    %55 = arith.mulf %54, %53 : vector<16x16xf32>
    %cst_22 = arith.constant 5.000000e-01 : f32
    %56 = vector.broadcast %cst_22 : f32 to vector<16x16xf32>
    %57 = arith.addf %55, %56 : vector<16x16xf32>
    %58 = arith.mulf %51, %32 : vector<16x16xf32>
    %59 = arith.mulf %46, %52 : vector<16x16xf32>
    %60 = arith.addf %58, %59 : vector<16x16xf32>
    %61 = math.tanh %60 : vector<16x16xf32>
    %62 = arith.mulf %57, %61 : vector<16x16xf32>
    %63 = arith.addf %35, %62 : vector<16x16xf32>
    %64 = vector.extract_strided_slice %7 {offsets = [2, 0, 0], sizes = [1, 16, 64], strides = [1, 1, 1]} : vector<8x16x64xf32> to vector<1x16x64xf32>
    %65 = vector.shape_cast %64 : vector<1x16x64xf32> to vector<16x64xf32>
    %66 = arith.truncf %62 : vector<16x16xf32> to vector<16x16xbf16>
    %cst_23 = arith.constant dense<0.000000e+00> : vector<16x64xf32>
    %67 = tpu.matmul %66, %8, %cst_23 {dimension_numbers = #tpu.dot_dimension_numbers<[1], [0], [0], [1], [0, 0, 1, 1], [], []>} : vector<16x16xbf16>, vector<16x64xbf16>, vector<16x64xf32> -> vector<16x64xf32>
    %68 = arith.addf %65, %67 : vector<16x64xf32>
    %69 = math.tanh %68 : vector<16x64xf32>
    %70 = vector.extract_strided_slice %69 {offsets = [0, 0], sizes = [16, 16], strides = [1, 1]} : vector<16x64xf32> to vector<16x16xf32>
    %cst_24 = arith.constant 5.000000e-01 : f32
    %71 = vector.broadcast %cst_24 : f32 to vector<16x16xf32>
    %72 = arith.mulf %71, %70 : vector<16x16xf32>
    %cst_25 = arith.constant 5.000000e-01 : f32
    %73 = vector.broadcast %cst_25 : f32 to vector<16x16xf32>
    %74 = arith.addf %72, %73 : vector<16x16xf32>
    %75 = vector.extract_strided_slice %69 {offsets = [0, 16], sizes = [16, 16], strides = [1, 1]} : vector<16x64xf32> to vector<16x16xf32>
    %cst_26 = arith.constant 5.000000e-01 : f32
    %76 = vector.broadcast %cst_26 : f32 to vector<16x16xf32>
    %77 = arith.mulf %76, %75 : vector<16x16xf32>
    %cst_27 = arith.constant 5.000000e-01 : f32
    %78 = vector.broadcast %cst_27 : f32 to vector<16x16xf32>
    %79 = arith.addf %77, %78 : vector<16x16xf32>
    %80 = vector.extract_strided_slice %69 {offsets = [0, 32], sizes = [16, 16], strides = [1, 1]} : vector<16x64xf32> to vector<16x16xf32>
    %81 = vector.extract_strided_slice %69 {offsets = [0, 48], sizes = [16, 16], strides = [1, 1]} : vector<16x64xf32> to vector<16x16xf32>
    %cst_28 = arith.constant 5.000000e-01 : f32
    %82 = vector.broadcast %cst_28 : f32 to vector<16x16xf32>
    %83 = arith.mulf %82, %81 : vector<16x16xf32>
    %cst_29 = arith.constant 5.000000e-01 : f32
    %84 = vector.broadcast %cst_29 : f32 to vector<16x16xf32>
    %85 = arith.addf %83, %84 : vector<16x16xf32>
    %86 = arith.mulf %79, %60 : vector<16x16xf32>
    %87 = arith.mulf %74, %80 : vector<16x16xf32>
    %88 = arith.addf %86, %87 : vector<16x16xf32>
    %89 = math.tanh %88 : vector<16x16xf32>
    %90 = arith.mulf %85, %89 : vector<16x16xf32>
    %91 = arith.addf %63, %90 : vector<16x16xf32>
    %92 = vector.extract_strided_slice %7 {offsets = [3, 0, 0], sizes = [1, 16, 64], strides = [1, 1, 1]} : vector<8x16x64xf32> to vector<1x16x64xf32>
    %93 = vector.shape_cast %92 : vector<1x16x64xf32> to vector<16x64xf32>
    %94 = arith.truncf %90 : vector<16x16xf32> to vector<16x16xbf16>
    %cst_30 = arith.constant dense<0.000000e+00> : vector<16x64xf32>
    %95 = tpu.matmul %94, %8, %cst_30 {dimension_numbers = #tpu.dot_dimension_numbers<[1], [0], [0], [1], [0, 0, 1, 1], [], []>} : vector<16x16xbf16>, vector<16x64xbf16>, vector<16x64xf32> -> vector<16x64xf32>
    %96 = arith.addf %93, %95 : vector<16x64xf32>
    %97 = math.tanh %96 : vector<16x64xf32>
    %98 = vector.extract_strided_slice %97 {offsets = [0, 0], sizes = [16, 16], strides = [1, 1]} : vector<16x64xf32> to vector<16x16xf32>
    %cst_31 = arith.constant 5.000000e-01 : f32
    %99 = vector.broadcast %cst_31 : f32 to vector<16x16xf32>
    %100 = arith.mulf %99, %98 : vector<16x16xf32>
    %cst_32 = arith.constant 5.000000e-01 : f32
    %101 = vector.broadcast %cst_32 : f32 to vector<16x16xf32>
    %102 = arith.addf %100, %101 : vector<16x16xf32>
    %103 = vector.extract_strided_slice %97 {offsets = [0, 16], sizes = [16, 16], strides = [1, 1]} : vector<16x64xf32> to vector<16x16xf32>
    %cst_33 = arith.constant 5.000000e-01 : f32
    %104 = vector.broadcast %cst_33 : f32 to vector<16x16xf32>
    %105 = arith.mulf %104, %103 : vector<16x16xf32>
    %cst_34 = arith.constant 5.000000e-01 : f32
    %106 = vector.broadcast %cst_34 : f32 to vector<16x16xf32>
    %107 = arith.addf %105, %106 : vector<16x16xf32>
    %108 = vector.extract_strided_slice %97 {offsets = [0, 32], sizes = [16, 16], strides = [1, 1]} : vector<16x64xf32> to vector<16x16xf32>
    %109 = vector.extract_strided_slice %97 {offsets = [0, 48], sizes = [16, 16], strides = [1, 1]} : vector<16x64xf32> to vector<16x16xf32>
    %cst_35 = arith.constant 5.000000e-01 : f32
    %110 = vector.broadcast %cst_35 : f32 to vector<16x16xf32>
    %111 = arith.mulf %110, %109 : vector<16x16xf32>
    %cst_36 = arith.constant 5.000000e-01 : f32
    %112 = vector.broadcast %cst_36 : f32 to vector<16x16xf32>
    %113 = arith.addf %111, %112 : vector<16x16xf32>
    %114 = arith.mulf %107, %88 : vector<16x16xf32>
    %115 = arith.mulf %102, %108 : vector<16x16xf32>
    %116 = arith.addf %114, %115 : vector<16x16xf32>
    %117 = math.tanh %116 : vector<16x16xf32>
    %118 = arith.mulf %113, %117 : vector<16x16xf32>
    %119 = arith.addf %91, %118 : vector<16x16xf32>
    %120 = vector.extract_strided_slice %7 {offsets = [4, 0, 0], sizes = [1, 16, 64], strides = [1, 1, 1]} : vector<8x16x64xf32> to vector<1x16x64xf32>
    %121 = vector.shape_cast %120 : vector<1x16x64xf32> to vector<16x64xf32>
    %122 = arith.truncf %118 : vector<16x16xf32> to vector<16x16xbf16>
    %cst_37 = arith.constant dense<0.000000e+00> : vector<16x64xf32>
    %123 = tpu.matmul %122, %8, %cst_37 {dimension_numbers = #tpu.dot_dimension_numbers<[1], [0], [0], [1], [0, 0, 1, 1], [], []>} : vector<16x16xbf16>, vector<16x64xbf16>, vector<16x64xf32> -> vector<16x64xf32>
    %124 = arith.addf %121, %123 : vector<16x64xf32>
    %125 = math.tanh %124 : vector<16x64xf32>
    %126 = vector.extract_strided_slice %125 {offsets = [0, 0], sizes = [16, 16], strides = [1, 1]} : vector<16x64xf32> to vector<16x16xf32>
    %cst_38 = arith.constant 5.000000e-01 : f32
    %127 = vector.broadcast %cst_38 : f32 to vector<16x16xf32>
    %128 = arith.mulf %127, %126 : vector<16x16xf32>
    %cst_39 = arith.constant 5.000000e-01 : f32
    %129 = vector.broadcast %cst_39 : f32 to vector<16x16xf32>
    %130 = arith.addf %128, %129 : vector<16x16xf32>
    %131 = vector.extract_strided_slice %125 {offsets = [0, 16], sizes = [16, 16], strides = [1, 1]} : vector<16x64xf32> to vector<16x16xf32>
    %cst_40 = arith.constant 5.000000e-01 : f32
    %132 = vector.broadcast %cst_40 : f32 to vector<16x16xf32>
    %133 = arith.mulf %132, %131 : vector<16x16xf32>
    %cst_41 = arith.constant 5.000000e-01 : f32
    %134 = vector.broadcast %cst_41 : f32 to vector<16x16xf32>
    %135 = arith.addf %133, %134 : vector<16x16xf32>
    %136 = vector.extract_strided_slice %125 {offsets = [0, 32], sizes = [16, 16], strides = [1, 1]} : vector<16x64xf32> to vector<16x16xf32>
    %137 = vector.extract_strided_slice %125 {offsets = [0, 48], sizes = [16, 16], strides = [1, 1]} : vector<16x64xf32> to vector<16x16xf32>
    %cst_42 = arith.constant 5.000000e-01 : f32
    %138 = vector.broadcast %cst_42 : f32 to vector<16x16xf32>
    %139 = arith.mulf %138, %137 : vector<16x16xf32>
    %cst_43 = arith.constant 5.000000e-01 : f32
    %140 = vector.broadcast %cst_43 : f32 to vector<16x16xf32>
    %141 = arith.addf %139, %140 : vector<16x16xf32>
    %142 = arith.mulf %135, %116 : vector<16x16xf32>
    %143 = arith.mulf %130, %136 : vector<16x16xf32>
    %144 = arith.addf %142, %143 : vector<16x16xf32>
    %145 = math.tanh %144 : vector<16x16xf32>
    %146 = arith.mulf %141, %145 : vector<16x16xf32>
    %147 = arith.addf %119, %146 : vector<16x16xf32>
    %148 = vector.extract_strided_slice %7 {offsets = [5, 0, 0], sizes = [1, 16, 64], strides = [1, 1, 1]} : vector<8x16x64xf32> to vector<1x16x64xf32>
    %149 = vector.shape_cast %148 : vector<1x16x64xf32> to vector<16x64xf32>
    %150 = arith.truncf %146 : vector<16x16xf32> to vector<16x16xbf16>
    %cst_44 = arith.constant dense<0.000000e+00> : vector<16x64xf32>
    %151 = tpu.matmul %150, %8, %cst_44 {dimension_numbers = #tpu.dot_dimension_numbers<[1], [0], [0], [1], [0, 0, 1, 1], [], []>} : vector<16x16xbf16>, vector<16x64xbf16>, vector<16x64xf32> -> vector<16x64xf32>
    %152 = arith.addf %149, %151 : vector<16x64xf32>
    %153 = math.tanh %152 : vector<16x64xf32>
    %154 = vector.extract_strided_slice %153 {offsets = [0, 0], sizes = [16, 16], strides = [1, 1]} : vector<16x64xf32> to vector<16x16xf32>
    %cst_45 = arith.constant 5.000000e-01 : f32
    %155 = vector.broadcast %cst_45 : f32 to vector<16x16xf32>
    %156 = arith.mulf %155, %154 : vector<16x16xf32>
    %cst_46 = arith.constant 5.000000e-01 : f32
    %157 = vector.broadcast %cst_46 : f32 to vector<16x16xf32>
    %158 = arith.addf %156, %157 : vector<16x16xf32>
    %159 = vector.extract_strided_slice %153 {offsets = [0, 16], sizes = [16, 16], strides = [1, 1]} : vector<16x64xf32> to vector<16x16xf32>
    %cst_47 = arith.constant 5.000000e-01 : f32
    %160 = vector.broadcast %cst_47 : f32 to vector<16x16xf32>
    %161 = arith.mulf %160, %159 : vector<16x16xf32>
    %cst_48 = arith.constant 5.000000e-01 : f32
    %162 = vector.broadcast %cst_48 : f32 to vector<16x16xf32>
    %163 = arith.addf %161, %162 : vector<16x16xf32>
    %164 = vector.extract_strided_slice %153 {offsets = [0, 32], sizes = [16, 16], strides = [1, 1]} : vector<16x64xf32> to vector<16x16xf32>
    %165 = vector.extract_strided_slice %153 {offsets = [0, 48], sizes = [16, 16], strides = [1, 1]} : vector<16x64xf32> to vector<16x16xf32>
    %cst_49 = arith.constant 5.000000e-01 : f32
    %166 = vector.broadcast %cst_49 : f32 to vector<16x16xf32>
    %167 = arith.mulf %166, %165 : vector<16x16xf32>
    %cst_50 = arith.constant 5.000000e-01 : f32
    %168 = vector.broadcast %cst_50 : f32 to vector<16x16xf32>
    %169 = arith.addf %167, %168 : vector<16x16xf32>
    %170 = arith.mulf %163, %144 : vector<16x16xf32>
    %171 = arith.mulf %158, %164 : vector<16x16xf32>
    %172 = arith.addf %170, %171 : vector<16x16xf32>
    %173 = math.tanh %172 : vector<16x16xf32>
    %174 = arith.mulf %169, %173 : vector<16x16xf32>
    %175 = arith.addf %147, %174 : vector<16x16xf32>
    %176 = vector.extract_strided_slice %7 {offsets = [6, 0, 0], sizes = [1, 16, 64], strides = [1, 1, 1]} : vector<8x16x64xf32> to vector<1x16x64xf32>
    %177 = vector.shape_cast %176 : vector<1x16x64xf32> to vector<16x64xf32>
    %178 = arith.truncf %174 : vector<16x16xf32> to vector<16x16xbf16>
    %cst_51 = arith.constant dense<0.000000e+00> : vector<16x64xf32>
    %179 = tpu.matmul %178, %8, %cst_51 {dimension_numbers = #tpu.dot_dimension_numbers<[1], [0], [0], [1], [0, 0, 1, 1], [], []>} : vector<16x16xbf16>, vector<16x64xbf16>, vector<16x64xf32> -> vector<16x64xf32>
    %180 = arith.addf %177, %179 : vector<16x64xf32>
    %181 = math.tanh %180 : vector<16x64xf32>
    %182 = vector.extract_strided_slice %181 {offsets = [0, 0], sizes = [16, 16], strides = [1, 1]} : vector<16x64xf32> to vector<16x16xf32>
    %cst_52 = arith.constant 5.000000e-01 : f32
    %183 = vector.broadcast %cst_52 : f32 to vector<16x16xf32>
    %184 = arith.mulf %183, %182 : vector<16x16xf32>
    %cst_53 = arith.constant 5.000000e-01 : f32
    %185 = vector.broadcast %cst_53 : f32 to vector<16x16xf32>
    %186 = arith.addf %184, %185 : vector<16x16xf32>
    %187 = vector.extract_strided_slice %181 {offsets = [0, 16], sizes = [16, 16], strides = [1, 1]} : vector<16x64xf32> to vector<16x16xf32>
    %cst_54 = arith.constant 5.000000e-01 : f32
    %188 = vector.broadcast %cst_54 : f32 to vector<16x16xf32>
    %189 = arith.mulf %188, %187 : vector<16x16xf32>
    %cst_55 = arith.constant 5.000000e-01 : f32
    %190 = vector.broadcast %cst_55 : f32 to vector<16x16xf32>
    %191 = arith.addf %189, %190 : vector<16x16xf32>
    %192 = vector.extract_strided_slice %181 {offsets = [0, 32], sizes = [16, 16], strides = [1, 1]} : vector<16x64xf32> to vector<16x16xf32>
    %193 = vector.extract_strided_slice %181 {offsets = [0, 48], sizes = [16, 16], strides = [1, 1]} : vector<16x64xf32> to vector<16x16xf32>
    %cst_56 = arith.constant 5.000000e-01 : f32
    %194 = vector.broadcast %cst_56 : f32 to vector<16x16xf32>
    %195 = arith.mulf %194, %193 : vector<16x16xf32>
    %cst_57 = arith.constant 5.000000e-01 : f32
    %196 = vector.broadcast %cst_57 : f32 to vector<16x16xf32>
    %197 = arith.addf %195, %196 : vector<16x16xf32>
    %198 = arith.mulf %191, %172 : vector<16x16xf32>
    %199 = arith.mulf %186, %192 : vector<16x16xf32>
    %200 = arith.addf %198, %199 : vector<16x16xf32>
    %201 = math.tanh %200 : vector<16x16xf32>
    %202 = arith.mulf %197, %201 : vector<16x16xf32>
    %203 = arith.addf %175, %202 : vector<16x16xf32>
    %204 = vector.extract_strided_slice %7 {offsets = [7, 0, 0], sizes = [1, 16, 64], strides = [1, 1, 1]} : vector<8x16x64xf32> to vector<1x16x64xf32>
    %205 = vector.shape_cast %204 : vector<1x16x64xf32> to vector<16x64xf32>
    %206 = arith.truncf %202 : vector<16x16xf32> to vector<16x16xbf16>
    %cst_58 = arith.constant dense<0.000000e+00> : vector<16x64xf32>
    %207 = tpu.matmul %206, %8, %cst_58 {dimension_numbers = #tpu.dot_dimension_numbers<[1], [0], [0], [1], [0, 0, 1, 1], [], []>} : vector<16x16xbf16>, vector<16x64xbf16>, vector<16x64xf32> -> vector<16x64xf32>
    %208 = arith.addf %205, %207 : vector<16x64xf32>
    %209 = math.tanh %208 : vector<16x64xf32>
    %210 = vector.extract_strided_slice %209 {offsets = [0, 0], sizes = [16, 16], strides = [1, 1]} : vector<16x64xf32> to vector<16x16xf32>
    %cst_59 = arith.constant 5.000000e-01 : f32
    %211 = vector.broadcast %cst_59 : f32 to vector<16x16xf32>
    %212 = arith.mulf %211, %210 : vector<16x16xf32>
    %cst_60 = arith.constant 5.000000e-01 : f32
    %213 = vector.broadcast %cst_60 : f32 to vector<16x16xf32>
    %214 = arith.addf %212, %213 : vector<16x16xf32>
    %215 = vector.extract_strided_slice %209 {offsets = [0, 16], sizes = [16, 16], strides = [1, 1]} : vector<16x64xf32> to vector<16x16xf32>
    %cst_61 = arith.constant 5.000000e-01 : f32
    %216 = vector.broadcast %cst_61 : f32 to vector<16x16xf32>
    %217 = arith.mulf %216, %215 : vector<16x16xf32>
    %cst_62 = arith.constant 5.000000e-01 : f32
    %218 = vector.broadcast %cst_62 : f32 to vector<16x16xf32>
    %219 = arith.addf %217, %218 : vector<16x16xf32>
    %220 = vector.extract_strided_slice %209 {offsets = [0, 32], sizes = [16, 16], strides = [1, 1]} : vector<16x64xf32> to vector<16x16xf32>
    %221 = vector.extract_strided_slice %209 {offsets = [0, 48], sizes = [16, 16], strides = [1, 1]} : vector<16x64xf32> to vector<16x16xf32>
    %cst_63 = arith.constant 5.000000e-01 : f32
    %222 = vector.broadcast %cst_63 : f32 to vector<16x16xf32>
    %223 = arith.mulf %222, %221 : vector<16x16xf32>
    %cst_64 = arith.constant 5.000000e-01 : f32
    %224 = vector.broadcast %cst_64 : f32 to vector<16x16xf32>
    %225 = arith.addf %223, %224 : vector<16x16xf32>
    %226 = arith.mulf %219, %200 : vector<16x16xf32>
    %227 = arith.mulf %214, %220 : vector<16x16xf32>
    %228 = arith.addf %226, %227 : vector<16x16xf32>
    %229 = math.tanh %228 : vector<16x16xf32>
    %230 = arith.mulf %225, %229 : vector<16x16xf32>
    %231 = arith.addf %203, %230 : vector<16x16xf32>
    %232 = arith.truncf %231 : vector<16x16xf32> to vector<16x16xbf16>
    %c0_65 = arith.constant 0 : index
    %c0_66 = arith.constant 0 : index
    %233 = vector.load %arg4[%c0_65, %c0_66] : memref<16x16xbf16, #tpu.memory_space<vmem>>, vector<16x16xbf16>
    %cst_67 = arith.constant dense<0.000000e+00> : vector<16x16xf32>
    %234 = tpu.matmul %232, %233, %cst_67 {dimension_numbers = #tpu.dot_dimension_numbers<[1], [0], [0], [1], [0, 0, 1, 1], [], []>} : vector<16x16xbf16>, vector<16x16xbf16>, vector<16x16xf32> -> vector<16x16xf32>
    %c0_68 = arith.constant 0 : index
    %c0_69 = arith.constant 0 : index
    %235 = vector.load %arg5[%c0_68, %c0_69] : memref<1x16xf32, #tpu.memory_space<vmem>>, vector<1x16xf32>
    %236 = vector.broadcast %235 : vector<1x16xf32> to vector<16x16xf32>
    %237 = arith.addf %234, %236 : vector<16x16xf32>
    %238 = math.tanh %237 : vector<16x16xf32>
    %239 = arith.truncf %238 : vector<16x16xf32> to vector<16x16xbf16>
    %c0_70 = arith.constant 0 : index
    %c0_71 = arith.constant 0 : index
    %240 = vector.load %arg6[%c0_70, %c0_71] : memref<16x16xbf16, #tpu.memory_space<vmem>>, vector<16x16xbf16>
    %cst_72 = arith.constant dense<0.000000e+00> : vector<16x16xf32>
    %241 = tpu.matmul %239, %240, %cst_72 {dimension_numbers = #tpu.dot_dimension_numbers<[1], [0], [0], [1], [0, 0, 1, 1], [], []>} : vector<16x16xbf16>, vector<16x16xbf16>, vector<16x16xf32> -> vector<16x16xf32>
    %c0_73 = arith.constant 0 : index
    %c0_74 = arith.constant 0 : index
    %242 = vector.load %arg7[%c0_73, %c0_74] : memref<1x16xf32, #tpu.memory_space<vmem>>, vector<1x16xf32>
    %243 = vector.broadcast %242 : vector<1x16xf32> to vector<16x16xf32>
    %244 = arith.addf %241, %243 : vector<16x16xf32>
    %245 = math.tanh %244 : vector<16x16xf32>
    %246 = arith.mulf %245, %245 : vector<16x16xf32>
    %cst_75 = arith.constant dense<0.000000e+00> : vector<16xf32>
    %247 = vector.multi_reduction <add>, %246, %cst_75 [1] : vector<16x16xf32> to vector<16xf32>
    %248 = vector.shape_cast %247 : vector<16xf32> to vector<16x1xf32>
    %249 = math.rsqrt %248 : vector<16x1xf32>
    %250 = vector.broadcast %249 : vector<16x1xf32> to vector<16x16xf32>
    %251 = arith.mulf %245, %250 : vector<16x16xf32>
    %c0_76 = arith.constant 0 : index
    %c0_77 = arith.constant 0 : index
    %252 = vector.load %arg8[%c0_76, %c0_77] : memref<16x16xf32, #tpu.memory_space<vmem>>, vector<16x16xf32>
    tpu.vector_store %arg8[%c0_76, %c0_77], %251 {strides = array<i32>} : memref<16x16xf32, #tpu.memory_space<vmem>>, vector<16x16xf32>,
    return
  }
}

</mosaic_0001>

<bundles_post_ra>
// kernel: tpu_custom_call.1
= control target key start
LH: loop header
LB: loop body
LE: loop exit
PB: predicated region body
PF: predicated region fallthrough
CT: control target
= control target key end

     0   :  { %vm120_vm0 = vcmask 1041408   ;;  %vm95_vm1 = vcmask 31744   ;;  %s1586_s0 = inlined_call_operand.vmem [shape: bf16[8,16,4], index: 0, kind: input, shape index: {}]   ;;  %s1587_s1 = inlined_call_operand.vmem [shape: bf16[4,64], index: 1, kind: input, shape index: {}]   ;;  %s1588_s2 = inlined_call_operand.vmem [shape: bf16[16,64], index: 2, kind: input, shape index: {}]   ;;  %s1589_s3 = inlined_call_operand.vmem [shape: f32[1,64], index: 3, kind: input, shape index: {}]   ;;  %s1590_s4 = inlined_call_operand.vmem [shape: bf16[16,16], index: 4, kind: input, shape index: {}]   ;;  %s1591_s5 = inlined_call_operand.vmem [shape: f32[1,16], index: 5, kind: input, shape index: {}]   ;;  %s1592_s6 = inlined_call_operand.vmem [shape: bf16[16,16], index: 6, kind: input, shape index: {}]   ;;  %s1593_s7 = inlined_call_operand.vmem [shape: f32[1,16], index: 7, kind: input, shape index: {}]   ;;  %s1594_s8 = inlined_call_operand.hbm [shape: f32[16,16], index: 8, kind: output, shape index: {}]  }
   0x1   :  { %v47_v0 = vld [vmem:[%s1587_s1] sm:$0x3]  ;;  %v1214_v3 = vld [vmem:[%s1586_s0 + $0x8] sm:$0xff]  }
   0x2   :  { %v1213_v1 = vld [vmem:[%s1586_s0] sm:$0xff]   ;;  %1203 = vmatprep.subr.msk.bf16.mxu0 %vm120_vm0, %v47_v0  ;;  %v122_v2 = vsel %vm120_vm0, %v47_v0, 0 }
   0x3   :  { %1132 = vmatpush3.bf16.msra.mxu0 %v122_v2  ;;  %1133 = vmatprep.mubr.msk.bf16.mxu0 %vm95_vm1, %v1213_v1 }
   0x6   :  { %1134 = vmatmul.mubr.msk.bf16.vlgmr.msra.gmra.mrb[0].mxu0 %vm95_vm1, %v1214_v3 }
   0x7   :  { %13 = vsyncpa [#allocation3], 0  ;;  %v1392_v4 = vld [vmem:[%s1589_s3] ss:$0 sm:$0xff]  ;;  %s1324_s12 = smov 96   ;;  %s1325_s3 = smov 16  }
   0x8   :  { %v1403_v27 = vld [vmem:[%s1588_s2] sm:$0xff]   ;;  %v1326_v28 = vmov 0.0   ;;  %vm1327_vm2 = vmmov 0   ;;  %s1328_s2 = smov 32   ;;  %s1329_s15 = smov 80   ;;  %vm275_vm3 = vcmask 130048  }
   0x9   :  { %1149 = vmatprep.subr.bf16.mxu1 %v1326_v28  ;;  %1151 = vmatprep.mubr.msk.bf16.mxu1 %vm1327_vm2, %v1326_v28  ;;  %v1216_v61 = vld [vmem:[%s1586_s0 + $0x10] sm:$0xff]   ;;  %v1217_v62 = vld [vmem:[%s1586_s0 + $0x18] sm:$0xff]  }
   0xa   :  { %1150 = vmatpush3.bf16.msra.mxu1 %v1403_v27  ;;  %1173 = vmatprep.subr.bf16.mxu0 %v1326_v28 }
   0xb   :  { %1155 = vmatprep.subr.bf16.mxu1 %v1326_v28  ;;  %1174 = vmatpush3.bf16.msra.mxu0 %v1403_v27 }
   0xc   :  { %1185 = vmatprep.subr.bf16.mxu0 %v1326_v28  ;;  %1137 = vmatprep.mubr.msk.bf16.mxu0 %vm95_vm1, %v1216_v61 }
   0xe   :  { %1138 = vmatmul.mubr.msk.bf16.gmra.mrb[4].mxu0 %vm95_vm1, %v1217_v62 }
  0xd9   :  { %v1135_v5 = vpop.f32.mrb[0].mxu0 }
  0xda   :  { %v158_v6 = vpop.f32.mrb[1].mxu0  ;;  %v167_v37 = vadd.f32 %v1135_v5, %v1392_v4 }
  0xdb   :  { %v159_v7 = vadd.f32 %v1392_v4, %v158_v6  ;;  %v1136_v8 = vpop.f32.mrb[2].mxu0 }
  0xdc   :  { %v161_v9 = vpop.f32.mrb[3].mxu0  ;;  %v170_v39 = vadd.f32 %v1136_v8, %v1392_v4 }
  0xdd   :  { %1224 = vtanh.f32 %v159_v7  ;;  %v162_v10 = vadd.f32 %v1392_v4, %v161_v9 }
  0xdf   :  { %1226 = vtanh.f32 %v162_v10 }
  0xe1   :  { %v1139_v7 = vpop.f32.mrb[4].mxu0 }
  0xe2   :  { %v174_v8 = vpop.f32.mrb[5].mxu0 }
  0xe3   :  { %v1140_v9 = vpop.f32.mrb[6].mxu0 }
  0xe4   :  { %v177_v10 = vpop.f32.mrb[7].mxu0 }
  0xe7   :  { %v1225_v11 = vpop.eup %1224 }
  0xe8   :  { %233 = vrot.lane.b32.xlu0 %v1225_v11, %s1324_s12  ;;  %v225_v13 = vmul.f32 0.5, %v1225_v11 }
  0xe9   :  { %v1227_v12 = vpop.eup %1226 }
  0xea   :  { %v227_v14 = vadd.f32 0.5, %v225_v13  ;;  %v226_v15 = vmul.f32 0.5, %v1227_v12 }
  0xec   :  { %235 = vrot.lane.b32.xlu0 %v1227_v12, %s1324_s12  ;;  %v228_v18 = vadd.f32 0.5, %v226_v15  ;;  %v229_v21 = vmul.f32 0.0, %v227_v14  ;;  %v175_v12 = vadd.f32 %v1392_v4, %v174_v8 }
  0xee   :  { %v230_v24 = vmul.f32 0.0, %v228_v18 }
 0x15a   :  { %v234_v16 = vpop.permute.xlu0 %233 }
 0x15b   :  { %v239_v17 = vmul.f32 %v234_v16, %v227_v14 }
 0x15d   :  { %243 = vrot.lane.b32.xlu1 %v239_v17, %s1325_s3 }
 0x15e   :  { %v236_v19 = vpop.permute.xlu0 %235 }
 0x15f   :  { %v240_v20 = vmul.f32 %v236_v19, %v228_v18 }
 0x161   :  { %245 = vrot.lane.b32.xlu1 %v240_v20, %s1325_s3 }
 0x1cf   :  { %v244_v22 = vpop.permute.xlu1 %243 }
 0x1d0   :  { %v249_v23 = vadd.f32 %v244_v22, %v229_v21 }
 0x1d2   :  { %1228 = vtanh.f32 %v249_v23 }
 0x1d3   :  { %v246_v25 = vpop.permute.xlu1 %245 }
 0x1d4   :  { %v250_v26 = vadd.f32 %v246_v25, %v230_v24 }
 0x1d6   :  { %1230 = vtanh.f32 %v250_v26 }
 0x1dc   :  { %v1229_v29 = vpop.eup %1228 }
 0x1dd   :  { %255 = vrot.lane.b32.xlu0 %v1229_v29, %s1328_s2 }
 0x1e0   :  { %v1231_v30 = vpop.eup %1230 }
 0x1e1   :  { %257 = vrot.lane.b32.xlu1 %v1231_v30, %s1328_s2 }
 0x24f   :  { %v256_v31 = vpop.permute.xlu0 %255 }
 0x250   :  { %v1415_v33 = vmul.f32 %v256_v31, %v227_v14  ;;  %v178_v14 = vadd.f32 %v1392_v4, %v177_v10 }
 0x253   :  { %v258_v32 = vpop.permute.xlu1 %257 }
 0x254   :  { %v1417_v34 = vmul.f32 %v258_v32, %v228_v18 }
 0x256   :  { %v265_v35 = vpack.c.bf16 %v1417_v34, %v1415_v33 }
 0x258   :  { %267 = vrot.lane.b32.xlu0 %v265_v35, %s1329_s15 }
 0x2ca   :  { %v268_v36 = vpop.permute.xlu0 %267 }
 0x2cb   :  { %1152 = vmatmul.mubr.msk.bf16.vlgmr.msra.gmra.mrb[0].mxu1 %vm275_vm3, %v268_v36 }
 0x2cc   :  { %1156 = vmatpush3.bf16.msra.mxu1 %v1403_v27  ;;  %1157 = vmatprep.mubr.msk.bf16.mxu1 %vm1327_vm2, %v1326_v28 }
 0x2cd   :  { %1161 = vmatprep.subr.bf16.mxu1 %v1326_v28 }
 0x39e   :  { %v313_v38 = vpop.f32.mrb[0].mxu1 }
 0x39f   :  { %v320_v40 = vadd.f32 %v313_v38, %v167_v37  ;;  %v1153_v41 = vpop.f32.mrb[1].mxu1 }
 0x3a0   :  { %v316_v42 = vpop.f32.mrb[2].mxu1 }
 0x3a1   :  { %1232 = vtanh.f32 %v320_v40  ;;  %v321_v43 = vadd.f32 %v316_v42, %v170_v39  ;;  %v1154_v44 = vpop.f32.mrb[3].mxu1 }
 0x3a3   :  { %1234 = vtanh.f32 %v321_v43 }
 0x3ab   :  { %v1233_v45 = vpop.eup %1232 }
 0x3ac   :  { %332 = vrot.lane.b32.xlu1 %v1233_v45, %s1324_s12  ;;  %v324_v47 = vmul.f32 0.5, %v1233_v45 }
 0x3ad   :  { %v1235_v46 = vpop.eup %1234 }
 0x3ae   :  { %334 = vrot.lane.b32.xlu0 %v1235_v46, %s1324_s12  ;;  %v325_v48 = vmul.f32 0.5, %v1235_v46  ;;  %v326_v49 = vadd.f32 0.5, %v324_v47 }
 0x3b0   :  { %v327_v52 = vadd.f32 0.5, %v325_v48  ;;  %v328_v55 = vmul.f32 %v326_v49, %v249_v23 }
 0x3b2   :  { %v329_v58 = vmul.f32 %v327_v52, %v250_v26 }
 0x41e   :  { %v333_v50 = vpop.permute.xlu1 %332 }
 0x41f   :  { %v338_v51 = vmul.f32 %v333_v50, %v326_v49 }
 0x420   :  { %v335_v53 = vpop.permute.xlu0 %334 }
 0x421   :  { %v339_v54 = vmul.f32 %v335_v53, %v327_v52  ;;  %342 = vrot.lane.b32.xlu1 %v338_v51, %s1325_s3 }
 0x423   :  { %344 = vrot.lane.b32.xlu0 %v339_v54, %s1325_s3 }
 0x493   :  { %v343_v56 = vpop.permute.xlu1 %342 }
 0x494   :  { %v348_v57 = vadd.f32 %v343_v56, %v328_v55 }
 0x495   :  { %v345_v59 = vpop.permute.xlu0 %344 }
 0x496   :  { %1236 = vtanh.f32 %v348_v57  ;;  %v349_v60 = vadd.f32 %v345_v59, %v329_v58 }
 0x498   :  { %1238 = vtanh.f32 %v349_v60 }
 0x4a0   :  { %v1237_v63 = vpop.eup %1236 }
 0x4a1   :  { %354 = vrot.lane.b32.xlu1 %v1237_v63, %s1328_s2 }
 0x4a2   :  { %v1239_v0 = vpop.eup %1238 }
 0x4a3   :  { %356 = vrot.lane.b32.xlu0 %v1239_v0, %s1328_s2 }
 0x513   :  { %v355_v1 = vpop.permute.xlu1 %354 }
 0x514   :  { %v360_v3 = vmul.f32 %v355_v1, %v326_v49 }
 0x515   :  { %v357_v2 = vpop.permute.xlu0 %356 }
 0x516   :  { %v361_v5 = vmul.f32 %v357_v2, %v327_v52  ;;  %v362_v43 = vadd.f32 %v360_v3, %v1415_v33  ;;  %v183_v33 = vadd.f32 %v1139_v7, %v1392_v4 }
 0x518   :  { %v364_v6 = vpack.c.bf16 %v361_v5, %v360_v3  ;;  %v363_v46 = vadd.f32 %v361_v5, %v1417_v34  ;;  %v186_v34 = vadd.f32 %v1140_v9, %v1392_v4 }
 0x51a   :  { %366 = vrot.lane.b32.xlu1 %v364_v6, %s1329_s15 }
 0x58c   :  { %v367_v11 = vpop.permute.xlu1 %366 }
 0x58d   :  { %1158 = vmatmul.mubr.msk.bf16.vlgmr.msra.gmra.mrb[4].mxu1 %vm275_vm3, %v367_v11  ;;  %v1218_v11 = vld [vmem:[%s1586_s0 + $0x20] sm:$0xff]  }
 0x58e   :  { %1162 = vmatpush3.bf16.msra.mxu1 %v1403_v27  ;;  %1163 = vmatprep.mubr.msk.bf16.mxu1 %vm1327_vm2, %v1326_v28 }
 0x58f   :  { %1167 = vmatprep.subr.bf16.mxu1 %v1326_v28  ;;  %1141 = vmatprep.mubr.msk.bf16.mxu0 %vm95_vm1, %v1218_v11 }
 0x660   :  { %v405_v13 = vpop.f32.mrb[4].mxu1 }
 0x661   :  { %v412_v15 = vadd.f32 %v405_v13, %v175_v12  ;;  %v1159_v16 = vpop.f32.mrb[5].mxu1  ;;  %v1219_v12 = vld [vmem:[%s1586_s0 + $0x28] sm:$0xff]  }
 0x662   :  { %v408_v17 = vpop.f32.mrb[6].mxu1  ;;  %1142 = vmatmul.mubr.msk.bf16.gmra.mrb[8].mxu0 %vm95_vm1, %v1219_v12 }
 0x663   :  { %1240 = vtanh.f32 %v412_v15  ;;  %v413_v18 = vadd.f32 %v408_v17, %v178_v14  ;;  %v1160_v19 = vpop.f32.mrb[7].mxu1 }
 0x665   :  { %1242 = vtanh.f32 %v413_v18 }
 0x66d   :  { %v1241_v20 = vpop.eup %1240 }
 0x66e   :  { %424 = vrot.lane.b32.xlu0 %v1241_v20, %s1324_s12  ;;  %v416_v22 = vmul.f32 0.5, %v1241_v20 }
 0x66f   :  { %v1243_v21 = vpop.eup %1242 }
 0x670   :  { %426 = vrot.lane.b32.xlu1 %v1243_v21, %s1324_s12  ;;  %v417_v23 = vmul.f32 0.5, %v1243_v21  ;;  %v418_v24 = vadd.f32 0.5, %v416_v22 }
 0x672   :  { %v419_v29 = vadd.f32 0.5, %v417_v23  ;;  %v420_v32 = vmul.f32 %v418_v24, %v348_v57 }
 0x674   :  { %v421_v37 = vmul.f32 %v419_v29, %v349_v60 }
 0x6e0   :  { %v425_v25 = vpop.permute.xlu0 %424 }
 0x6e1   :  { %v430_v26 = vmul.f32 %v425_v25, %v418_v24 }
 0x6e2   :  { %v427_v30 = vpop.permute.xlu1 %426 }
 0x6e3   :  { %v431_v31 = vmul.f32 %v427_v30, %v419_v29  ;;  %434 = vrot.lane.b32.xlu0 %v430_v26, %s1325_s3 }
 0x6e5   :  { %436 = vrot.lane.b32.xlu1 %v431_v31, %s1325_s3 }
 0x735   :  { %v1482_v22 = vpop.f32.mrb[8].mxu0 }
 0x736   :  { %v190_v23 = vpop.f32.mrb[9].mxu0 }
 0x755   :  { %v435_v35 = vpop.permute.xlu0 %434 }
 0x756   :  { %v440_v36 = vadd.f32 %v435_v35, %v420_v32 }
 0x757   :  { %v437_v38 = vpop.permute.xlu1 %436 }
 0x758   :  { %1244 = vtanh.f32 %v440_v36  ;;  %v441_v39 = vadd.f32 %v437_v38, %v421_v37 }
 0x75a   :  { %1246 = vtanh.f32 %v441_v39 }
 0x762   :  { %v1245_v40 = vpop.eup %1244 }
 0x763   :  { %446 = vrot.lane.b32.xlu0 %v1245_v40, %s1328_s2 }
 0x764   :  { %v1247_v41 = vpop.eup %1246 }
 0x765   :  { %448 = vrot.lane.b32.xlu1 %v1247_v41, %s1328_s2 }
 0x7d5   :  { %v447_v42 = vpop.permute.xlu0 %446 }
 0x7d6   :  { %v452_v44 = vmul.f32 %v447_v42, %v418_v24  ;;  %v1484_v24 = vpop.f32.mrb[10].mxu0 }
 0x7d7   :  { %v449_v45 = vpop.permute.xlu1 %448  ;;  %v193_v25 = vpop.f32.mrb[11].mxu0 }
 0x7d8   :  { %v454_v47 = vadd.f32 %v452_v44, %v362_v43  ;;  %v453_v48 = vmul.f32 %v449_v45, %v419_v29  ;;  %v191_v29 = vadd.f32 %v1392_v4, %v190_v23  ;;  %v194_v31 = vadd.f32 %v1392_v4, %v193_v25 }
 0x7da   :  { %v455_v49 = vadd.f32 %v453_v48, %v363_v46  ;;  %v456_v50 = vpack.c.bf16 %v453_v48, %v452_v44 }
 0x7dc   :  { %458 = vrot.lane.b32.xlu0 %v456_v50, %s1329_s15 }
 0x84e   :  { %v459_v51 = vpop.permute.xlu0 %458 }
 0x84f   :  { %1164 = vmatmul.mubr.msk.bf16.vlgmr.msra.gmra.mrb[8].mxu1 %vm275_vm3, %v459_v51 }
 0x850   :  { %1168 = vmatpush3.bf16.msra.mxu1 %v1403_v27  ;;  %1169 = vmatprep.mubr.msk.bf16.mxu1 %vm1327_vm2, %v1326_v28 }
 0x851   :  { %1179 = vmatprep.subr.bf16.mxu1 %v1326_v28 }
 0x922   :  { %v497_v52 = vpop.f32.mrb[8].mxu1 }
 0x923   :  { %v504_v53 = vadd.f32 %v497_v52, %v183_v33  ;;  %v1165_v54 = vpop.f32.mrb[9].mxu1 }
 0x924   :  { %v500_v55 = vpop.f32.mrb[10].mxu1  ;;  %v1221_v54 = vld [vmem:[%s1586_s0 + $0x38] sm:$0xff]  }
 0x925   :  { %1248 = vtanh.f32 %v504_v53  ;;  %v505_v56 = vadd.f32 %v500_v55, %v186_v34  ;;  %v1166_v57 = vpop.f32.mrb[11].mxu1  ;;  %v1220_v53 = vld [vmem:[%s1586_s0 + $0x30] sm:$0xff]  }
 0x926   :  { %1145 = vmatprep.mubr.msk.bf16.mxu0 %vm95_vm1, %v1220_v53 }
 0x927   :  { %1250 = vtanh.f32 %v505_v56  ;;  %1146 = vmatmul.mubr.msk.bf16.gmra.mrb[12].mxu0 %vm95_vm1, %v1221_v54 }
 0x928   :  { %1175 = vmatprep.mubr.msk.bf16.mxu0 %vm1327_vm2, %v1326_v28 }
 0x92f   :  { %v1249_v58 = vpop.eup %1248 }
 0x930   :  { %516 = vrot.lane.b32.xlu1 %v1249_v58, %s1324_s12  ;;  %v508_v60 = vmul.f32 0.5, %v1249_v58 }
 0x931   :  { %v1251_v59 = vpop.eup %1250 }
 0x932   :  { %518 = vrot.lane.b32.xlu0 %v1251_v59, %s1324_s12  ;;  %v509_v61 = vmul.f32 0.5, %v1251_v59  ;;  %v510_v62 = vadd.f32 0.5, %v508_v60 }
 0x934   :  { %v511_v1 = vadd.f32 0.5, %v509_v61  ;;  %v512_v5 = vmul.f32 %v510_v62, %v440_v36 }
 0x936   :  { %v513_v8 = vmul.f32 %v511_v1, %v441_v39 }
 0x9a2   :  { %v517_v63 = vpop.permute.xlu1 %516 }
 0x9a3   :  { %v522_v0 = vmul.f32 %v517_v63, %v510_v62 }
 0x9a4   :  { %v519_v2 = vpop.permute.xlu0 %518 }
 0x9a5   :  { %v523_v3 = vmul.f32 %v519_v2, %v511_v1  ;;  %526 = vrot.lane.b32.xlu1 %v522_v0, %s1325_s3 }
 0x9a7   :  { %528 = vrot.lane.b32.xlu0 %v523_v3, %s1325_s3 }
 0x9fa   :  { %v1510_v0 = vpop.f32.mrb[12].mxu0 }
 0xa17   :  { %v527_v6 = vpop.permute.xlu1 %526 }
 0xa18   :  { %v532_v7 = vadd.f32 %v527_v6, %v512_v5  ;;  %v199_v6 = vadd.f32 %v1482_v22, %v1392_v4 }
 0xa19   :  { %v529_v9 = vpop.permute.xlu0 %528 }
 0xa1a   :  { %1252 = vtanh.f32 %v532_v7  ;;  %v533_v10 = vadd.f32 %v529_v9, %v513_v8  ;;  %v202_v8 = vadd.f32 %v1484_v24, %v1392_v4 }
 0xa1c   :  { %1254 = vtanh.f32 %v533_v10 }
 0xa24   :  { %v1253_v13 = vpop.eup %1252 }
 0xa25   :  { %538 = vrot.lane.b32.xlu1 %v1253_v13, %s1328_s2 }
 0xa26   :  { %v1255_v14 = vpop.eup %1254 }
 0xa27   :  { %540 = vrot.lane.b32.xlu0 %v1255_v14, %s1328_s2 }
 0xa97   :  { %v539_v15 = vpop.permute.xlu1 %538 }
 0xa98   :  { %v544_v16 = vmul.f32 %v539_v15, %v510_v62 }
 0xa99   :  { %v541_v17 = vpop.permute.xlu0 %540 }
 0xa9a   :  { %v546_v18 = vadd.f32 %v544_v16, %v454_v47  ;;  %v545_v19 = vmul.f32 %v541_v17, %v511_v1  ;;  %v206_v1 = vpop.f32.mrb[13].mxu0 }
 0xa9b   :  { %v1512_v2 = vpop.f32.mrb[14].mxu0 }
 0xa9c   :  { %v547_v20 = vadd.f32 %v545_v19, %v455_v49  ;;  %v548_v21 = vpack.c.bf16 %v545_v19, %v544_v16  ;;  %v209_v3 = vpop.f32.mrb[15].mxu0 }
 0xa9e   :  { %550 = vrot.lane.b32.xlu1 %v548_v21, %s1329_s15 }
 0xb10   :  { %v551_v26 = vpop.permute.xlu1 %550 }
 0xb11   :  { %1170 = vmatmul.mubr.msk.bf16.vlgmr.msra.gmra.mrb[12].mxu1 %vm275_vm3, %v551_v26 }
 0xb12   :  { %1180 = vmatpush3.bf16.msra.mxu1 %v1403_v27  ;;  %1181 = vmatprep.mubr.msk.bf16.mxu1 %vm1327_vm2, %v1326_v28 }
 0xb13   :  { %1191 = vmatprep.subr.bf16.mxu1 %v1326_v28 }
 0xbe4   :  { %v589_v30 = vpop.f32.mrb[12].mxu1 }
 0xbe5   :  { %v596_v32 = vadd.f32 %v589_v30, %v191_v29  ;;  %v1171_v35 = vpop.f32.mrb[13].mxu1 }
 0xbe6   :  { %v592_v36 = vpop.f32.mrb[14].mxu1 }
 0xbe7   :  { %1256 = vtanh.f32 %v596_v32  ;;  %v597_v37 = vadd.f32 %v592_v36, %v194_v31  ;;  %v1172_v38 = vpop.f32.mrb[15].mxu1 }
 0xbe9   :  { %1258 = vtanh.f32 %v597_v37 }
 0xbf1   :  { %v1257_v39 = vpop.eup %1256 }
 0xbf2   :  { %608 = vrot.lane.b32.xlu0 %v1257_v39, %s1324_s12  ;;  %v600_v41 = vmul.f32 0.5, %v1257_v39 }
 0xbf3   :  { %v1259_v40 = vpop.eup %1258 }
 0xbf4   :  { %610 = vrot.lane.b32.xlu1 %v1259_v40, %s1324_s12  ;;  %v601_v42 = vmul.f32 0.5, %v1259_v40  ;;  %v602_v43 = vadd.f32 0.5, %v600_v41 }
 0xbf6   :  { %v603_v46 = vadd.f32 0.5, %v601_v42  ;;  %v604_v49 = vmul.f32 %v602_v43, %v532_v7 }
 0xbf8   :  { %v605_v33 = vmul.f32 %v603_v46, %v533_v10 }
 0xc64   :  { %v609_v44 = vpop.permute.xlu0 %608 }
 0xc65   :  { %v614_v45 = vmul.f32 %v609_v44, %v602_v43 }
 0xc66   :  { %v611_v47 = vpop.permute.xlu1 %610 }
 0xc67   :  { %v615_v48 = vmul.f32 %v611_v47, %v603_v46  ;;  %618 = vrot.lane.b32.xlu0 %v614_v45, %s1325_s3  ;;  %v210_v45 = vadd.f32 %v1392_v4, %v209_v3 }
 0xc69   :  { %620 = vrot.lane.b32.xlu1 %v615_v48, %s1325_s3 }
 0xcd9   :  { %v619_v50 = vpop.permute.xlu0 %618 }
 0xcda   :  { %v624_v51 = vadd.f32 %v619_v50, %v604_v49 }
 0xcdb   :  { %v621_v52 = vpop.permute.xlu1 %620 }
 0xcdc   :  { %1260 = vtanh.f32 %v624_v51  ;;  %v625_v34 = vadd.f32 %v621_v52, %v605_v33 }
 0xcde   :  { %1262 = vtanh.f32 %v625_v34 }
 0xce6   :  { %v1261_v55 = vpop.eup %1260 }
 0xce7   :  { %630 = vrot.lane.b32.xlu0 %v1261_v55, %s1328_s2 }
 0xce8   :  { %v1263_v56 = vpop.eup %1262 }
 0xce9   :  { %632 = vrot.lane.b32.xlu1 %v1263_v56, %s1328_s2 }
 0xd59   :  { %v631_v57 = vpop.permute.xlu0 %630 }
 0xd5a   :  { %v636_v58 = vmul.f32 %v631_v57, %v602_v43  ;;  %v207_v43 = vadd.f32 %v1392_v4, %v206_v1 }
 0xd5b   :  { %v633_v59 = vpop.permute.xlu1 %632 }
 0xd5c   :  { %v638_v60 = vadd.f32 %v636_v58, %v546_v18  ;;  %v637_v61 = vmul.f32 %v633_v59, %v603_v46 }
 0xd5e   :  { %v639_v62 = vadd.f32 %v637_v61, %v547_v20  ;;  %v640_v63 = vpack.c.bf16 %v637_v61, %v636_v58 }
 0xd60   :  { %642 = vrot.lane.b32.xlu0 %v640_v63, %s1329_s15 }
 0xdd2   :  { %v643_v5 = vpop.permute.xlu0 %642 }
 0xdd3   :  { %1176 = vmatmul.mubr.msk.bf16.vlgmr.msra.gmra.mrb[16].mxu0 %vm275_vm3, %v643_v5 }
 0xdd4   :  { %1186 = vmatpush3.bf16.msra.mxu0 %v1403_v27  ;;  %1187 = vmatprep.mubr.msk.bf16.mxu0 %vm1327_vm2, %v1326_v28 }
 0xdd5   :  { %1197 = vmatprep.subr.bf16.mxu0 %v1326_v28 }
 0xea6   :  { %v681_v7 = vpop.f32.mrb[16].mxu0 }
 0xea7   :  { %v688_v9 = vadd.f32 %v681_v7, %v199_v6  ;;  %v1177_v10 = vpop.f32.mrb[17].mxu0 }
 0xea8   :  { %v684_v11 = vpop.f32.mrb[18].mxu0 }
 0xea9   :  { %1264 = vtanh.f32 %v688_v9  ;;  %v689_v12 = vadd.f32 %v684_v11, %v202_v8  ;;  %v1178_v13 = vpop.f32.mrb[19].mxu0 }
 0xeab   :  { %1266 = vtanh.f32 %v689_v12 }
 0xeb3   :  { %v1265_v27 = vpop.eup %1264 }
 0xeb4   :  { %700 = vrot.lane.b32.xlu1 %v1265_v27, %s1324_s12  ;;  %v692_v15 = vmul.f32 0.5, %v1265_v27  ;;  %v215_v27 = vadd.f32 %v1510_v0, %v1392_v4 }
 0xeb5   :  { %v1267_v14 = vpop.eup %1266 }
 0xeb6   :  { %702 = vrot.lane.b32.xlu0 %v1267_v14, %s1324_s12  ;;  %v693_v16 = vmul.f32 0.5, %v1267_v14  ;;  %v694_v17 = vadd.f32 0.5, %v692_v15  ;;  %v218_v15 = vadd.f32 %v1512_v2, %v1392_v4 }
 0xeb8   :  { %v695_v20 = vadd.f32 0.5, %v693_v16  ;;  %v696_v23 = vmul.f32 %v694_v17, %v624_v51 }
 0xeba   :  { %v697_v26 = vmul.f32 %v695_v20, %v625_v34 }
 0xf26   :  { %v701_v18 = vpop.permute.xlu1 %700 }
 0xf27   :  { %v706_v19 = vmul.f32 %v701_v18, %v694_v17 }
 0xf28   :  { %v703_v21 = vpop.permute.xlu0 %702 }
 0xf29   :  { %v707_v22 = vmul.f32 %v703_v21, %v695_v20  ;;  %710 = vrot.lane.b32.xlu1 %v706_v19, %s1325_s3 }
 0xf2b   :  { %712 = vrot.lane.b32.xlu0 %v707_v22, %s1325_s3 }
 0xf9b   :  { %v711_v24 = vpop.permute.xlu1 %710 }
 0xf9c   :  { %v716_v25 = vadd.f32 %v711_v24, %v696_v23 }
 0xf9d   :  { %v713_v29 = vpop.permute.xlu0 %712 }
 0xf9e   :  { %1268 = vtanh.f32 %v716_v25  ;;  %v717_v30 = vadd.f32 %v713_v29, %v697_v26 }
 0xfa0   :  { %1270 = vtanh.f32 %v717_v30 }
 0xfa8   :  { %v1269_v31 = vpop.eup %1268 }
 0xfa9   :  { %722 = vrot.lane.b32.xlu1 %v1269_v31, %s1328_s2 }
 0xfaa   :  { %v1271_v32 = vpop.eup %1270 }
 0xfab   :  { %724 = vrot.lane.b32.xlu0 %v1271_v32, %s1328_s2 }
0x101b   :  { %v723_v35 = vpop.permute.xlu1 %722 }
0x101c   :  { %v728_v36 = vmul.f32 %v723_v35, %v694_v17 }
0x101d   :  { %v725_v37 = vpop.permute.xlu0 %724 }
0x101e   :  { %v730_v38 = vadd.f32 %v728_v36, %v638_v60  ;;  %v729_v39 = vmul.f32 %v725_v37, %v695_v20  ;;  %v1222_v37 = vld [vmem:[%s1590_s4] sm:$0xff]  }
0x1020   :  { %v731_v40 = vadd.f32 %v729_v39, %v639_v62  ;;  %v732_v41 = vpack.c.bf16 %v729_v39, %v728_v36 }
0x1022   :  { %734 = vrot.lane.b32.xlu1 %v732_v41, %s1329_s15 }
0x1094   :  { %v735_v42 = vpop.permute.xlu1 %734 }
0x1095   :  { %1182 = vmatmul.mubr.msk.bf16.vlgmr.msra.gmra.mrb[16].mxu1 %vm275_vm3, %v735_v42 }
0x1096   :  { %1193 = vmatprep.mubr.msk.bf16.mxu1 %vm1327_vm2, %v1326_v28  ;;  %1192 = vmatpush3.bf16.msra.mxu1 %v1222_v37 }
0x1168   :  { %v773_v44 = vpop.f32.mrb[16].mxu1 }
0x1169   :  { %v780_v46 = vadd.f32 %v773_v44, %v207_v43  ;;  %v1183_v47 = vpop.f32.mrb[17].mxu1 }
0x116a   :  { %v776_v48 = vpop.f32.mrb[18].mxu1 }
0x116b   :  { %1272 = vtanh.f32 %v780_v46  ;;  %v781_v49 = vadd.f32 %v776_v48, %v210_v45  ;;  %v1184_v50 = vpop.f32.mrb[19].mxu1  ;;  %v1223_v48 = vld [vmem:[%s1592_s6] sm:$0xff]  }
0x116d   :  { %1274 = vtanh.f32 %v781_v49  ;;  %v1098_v49 = vld [vmem:[%s1591_s5] ss:$0 sm:$0xff]  ;;  %s1330_s5 = smov [#allocation2]  }
0x1175   :  { %v1273_v51 = vpop.eup %1272 }
0x1176   :  { %792 = vrot.lane.b32.xlu0 %v1273_v51, %s1324_s12  ;;  %v784_v52 = vmul.f32 0.5, %v1273_v51 }
0x1177   :  { %v1275_v33 = vpop.eup %1274 }
0x1178   :  { %794 = vrot.lane.b32.xlu1 %v1275_v33, %s1324_s12  ;;  %v785_v34 = vmul.f32 0.5, %v1275_v33  ;;  %v786_v53 = vadd.f32 0.5, %v784_v52 }
0x117a   :  { %v787_v56 = vadd.f32 0.5, %v785_v34  ;;  %v788_v59 = vmul.f32 %v786_v53, %v716_v25 }
0x117c   :  { %v789_v62 = vmul.f32 %v787_v56, %v717_v30 }
0x11e8   :  { %v793_v54 = vpop.permute.xlu0 %792 }
0x11e9   :  { %v798_v55 = vmul.f32 %v793_v54, %v786_v53 }
0x11ea   :  { %v795_v57 = vpop.permute.xlu1 %794 }
0x11eb   :  { %v799_v58 = vmul.f32 %v795_v57, %v787_v56  ;;  %802 = vrot.lane.b32.xlu0 %v798_v55, %s1325_s3  ;;  %v1101_v57 = vld [vmem:[%s1593_s7] ss:$0 sm:$0xff]  ;;  %s1062_s7 = sshll.u32 %s1330_s5, 4  ;;  %s1063_s7 = int_to_ptr.vmem [resolvable:$true] %s1062_s7 }
0x11ec   :  { %s1300_s11 = scalar_lea.vmem %s1063_s7, 256  ;;  %p1305_p1 = scmp.lt.s32.totalorder %s1063_s7, %s1063_s7 }
0x11ed   :  { %804 = vrot.lane.b32.xlu1 %v799_v58, %s1325_s3  ;;  %p1301_p0 = scmp.ne.s32.totalorder %s1063_s7, %s1300_s11  ;;  %p1306_p2 = scmp.lt.s32.totalorder %s1300_s11, %s1300_s11 }
0x11ef   :  { %p1307_p3 = por %p1306_p2, %p1305_p1 }
0x11f1   :  { %p1308_p4 = pnand %p1307_p3, %p1301_p0 }
0x125d   :  { %v803_v60 = vpop.permute.xlu0 %802 }
0x125e   :  { %v808_v61 = vadd.f32 %v803_v60, %v788_v59 }
0x125f   :  { %v805_v63 = vpop.permute.xlu1 %804 }
0x1260   :  { %1276 = vtanh.f32 %v808_v61  ;;  %v809_v1 = vadd.f32 %v805_v63, %v789_v62 }
0x1262   :  { %1278 = vtanh.f32 %v809_v1 }
0x126a   :  { %v1277_v3 = vpop.eup %1276 }
0x126b   :  { %814 = vrot.lane.b32.xlu0 %v1277_v3, %s1328_s2 }
0x126c   :  { %v1279_v5 = vpop.eup %1278 }
0x126d   :  { %816 = vrot.lane.b32.xlu1 %v1279_v5, %s1328_s2 }
0x12dd   :  { %v815_v6 = vpop.permute.xlu0 %814 }
0x12de   :  { %v820_v7 = vmul.f32 %v815_v6, %v786_v53 }
0x12df   :  { %v817_v8 = vpop.permute.xlu1 %816 }
0x12e0   :  { %v822_v9 = vadd.f32 %v820_v7, %v730_v38  ;;  %v821_v10 = vmul.f32 %v817_v8, %v787_v56 }
0x12e2   :  { %v823_v11 = vadd.f32 %v821_v10, %v731_v40  ;;  %v824_v12 = vpack.c.bf16 %v821_v10, %v820_v7 }
0x12e4   :  { %826 = vrot.lane.b32.xlu0 %v824_v12, %s1329_s15 }
0x1356   :  { %v827_v13 = vpop.permute.xlu0 %826 }
0x1357   :  { %1188 = vmatmul.mubr.msk.bf16.vlgmr.msra.gmra.mrb[20].mxu0 %vm275_vm3, %v827_v13 }
0x1358   :  { %1199 = vmatprep.mubr.msk.bf16.mxu0 %vm1327_vm2, %v1326_v28  ;;  %1198 = vmatpush3.bf16.msra.mxu0 %v1223_v48 }
0x142a   :  { %v865_v14 = vpop.f32.mrb[20].mxu0 }
0x142b   :  { %v872_v16 = vadd.f32 %v865_v14, %v215_v27  ;;  %v1189_v17 = vpop.f32.mrb[21].mxu0 }
0x142c   :  { %v868_v18 = vpop.f32.mrb[22].mxu0 }
0x142d   :  { %1280 = vtanh.f32 %v872_v16  ;;  %v873_v19 = vadd.f32 %v868_v18, %v218_v15  ;;  %v1190_v20 = vpop.f32.mrb[23].mxu0 }
0x142f   :  { %1282 = vtanh.f32 %v873_v19 }
0x1437   :  { %v1281_v21 = vpop.eup %1280 }
0x1438   :  { %884 = vrot.lane.b32.xlu1 %v1281_v21, %s1324_s12  ;;  %v876_v28 = vmul.f32 0.5, %v1281_v21 }
0x1439   :  { %v1283_v22 = vpop.eup %1282 }
0x143a   :  { %886 = vrot.lane.b32.xlu0 %v1283_v22, %s1324_s12  ;;  %v877_v23 = vmul.f32 0.5, %v1283_v22  ;;  %v878_v0 = vadd.f32 0.5, %v876_v28 }
0x143c   :  { %v879_v26 = vadd.f32 0.5, %v877_v23  ;;  %v880_v29 = vmul.f32 %v878_v0, %v808_v61 }
0x143e   :  { %v881_v32 = vmul.f32 %v879_v26, %v809_v1 }
0x14aa   :  { %v885_v24 = vpop.permute.xlu1 %884 }
0x14ab   :  { %v890_v25 = vmul.f32 %v885_v24, %v878_v0 }
0x14ac   :  { %v887_v4 = vpop.permute.xlu0 %886 }
0x14ad   :  { %v891_v2 = vmul.f32 %v887_v4, %v879_v26  ;;  %894 = vrot.lane.b32.xlu1 %v890_v25, %s1325_s3 }
0x14af   :  { %896 = vrot.lane.b32.xlu0 %v891_v2, %s1325_s3 }
0x151f   :  { %v895_v30 = vpop.permute.xlu1 %894 }
0x1520   :  { %v900_v31 = vadd.f32 %v895_v30, %v880_v29 }
0x1521   :  { %v897_v35 = vpop.permute.xlu0 %896 }
0x1522   :  { %1284 = vtanh.f32 %v900_v31  ;;  %v901_v36 = vadd.f32 %v897_v35, %v881_v32 }
0x1524   :  { %1286 = vtanh.f32 %v901_v36 }
0x152c   :  { %v1285_v38 = vpop.eup %1284 }
0x152d   :  { %906 = vrot.lane.b32.xlu1 %v1285_v38, %s1328_s2 }
0x152e   :  { %v1287_v39 = vpop.eup %1286 }
0x152f   :  { %908 = vrot.lane.b32.xlu0 %v1287_v39, %s1328_s2 }
0x159f   :  { %v907_v40 = vpop.permute.xlu1 %906 }
0x15a0   :  { %v912_v41 = vmul.f32 %v907_v40, %v878_v0 }
0x15a1   :  { %v909_v42 = vpop.permute.xlu0 %908 }
0x15a2   :  { %v913_v43 = vmul.f32 %v909_v42, %v879_v26  ;;  %v914_v44 = vadd.f32 %v912_v41, %v822_v9 }
0x15a4   :  { %v915_v45 = vadd.f32 %v913_v43, %v823_v11 }
0x15a6   :  { %v916_v46 = vpack.c.bf16 %v915_v45, %v914_v44 }
0x15a8   :  { %927 = vrot.lane.b32.xlu1 %v916_v46, %s1329_s15 }
0x161a   :  { %v928_v47 = vpop.permute.xlu1 %927 }
0x161b   :  { %1194 = vmatmul.mubr.msk.bf16.vlgmr.msra.gmra.mrb[20].mxu1 %vm275_vm3, %v928_v47 }
0x16ee   :  { %v972_v50 = vpop.f32.mrb[20].mxu1 }
0x16ef   :  { %v973_v51 = vadd.f32 %v1098_v49, %v972_v50  ;;  %v1195_v33 = vpop.f32.mrb[21].mxu1 }
0x16f0   :  { %v975_v52 = vpop.f32.mrb[22].mxu1 }
0x16f1   :  { %v976_v34 = vadd.f32 %v1098_v49, %v975_v52  ;;  %v1196_v53 = vpop.f32.mrb[23].mxu1  ;;  %1288 = vtanh.f32 %v973_v51 }
0x16f3   :  { %1290 = vtanh.f32 %v976_v34 }
0x16fb   :  { %v1289_v54 = vpop.eup %1288 }
0x16fd   :  { %v1291_v55 = vpop.eup %1290 }
0x16fe   :  { %v981_v56 = vpack.c.bf16 %v1291_v55, %v1289_v54 }
0x1700   :  { %1200 = vmatmul.mubr.msk.bf16.vlgmr.msra.gmra.mrb[24].mxu0 %vm275_vm3, %v981_v56 }
0x17d3   :  { %v1034_v58 = vpop.f32.mrb[24].mxu0 }
0x17d4   :  { %v1035_v59 = vadd.f32 %v1101_v57, %v1034_v58  ;;  %v1201_v60 = vpop.f32.mrb[25].mxu0 }
0x17d5   :  { %v1037_v61 = vpop.f32.mrb[26].mxu0 }
0x17d6   :  { %1292 = vtanh.f32 %v1035_v59  ;;  %v1038_v62 = vadd.f32 %v1101_v57, %v1037_v61  ;;  %v1202_v63 = vpop.f32.mrb[27].mxu0 }
0x17d8   :  { %1294 = vtanh.f32 %v1038_v62 }
0x17e0   :  { %v1293_v1 = vpop.eup %1292 }
0x17e1   :  { %v1043_v3 = vmul.f32 %v1293_v1, %v1293_v1 }
0x17e2   :  { %v1295_v5 = vpop.eup %1294 }
0x17e3   :  { %v1045_v6 = vsel %vm275_vm3, %v1043_v3, 0.0  ;;  %v1044_v7 = vmul.f32 %v1295_v5, %v1295_v5 }
0x17e4   :  { %1046 = vadd.xlane.f32.xlu0 %v1045_v6 }
0x17e5   :  { %v1048_v8 = vsel %vm275_vm3, %v1044_v7, 0.0 }
0x17e6   :  { %1049 = vadd.xlane.f32.xlu1 %v1048_v8 }
0x1871   :  { %v1047_v9 = vpop.xlane.xlu0 %1046 }
0x1872   :  { %1296 = vrsqrt.f32 %v1047_v9 }
0x1873   :  { %v1050_v10 = vpop.xlane.xlu1 %1049 }
0x1874   :  { %1298 = vrsqrt.f32 %v1050_v10 }
0x187c   :  { %v1297_v11 = vpop.eup %1296 }
0x187d   :  { %v1053_v12 = vmul.f32 %v1297_v11, %v1293_v1 }
0x187e   :  { %v1299_v13 = vpop.eup %1298 }
0x187f   :  { %v1054_v27 = vmul.f32 %v1299_v13, %v1295_v5  ;;  %1055 = vst.msk [vmem:[#allocation2] sm:$0xff] %vm275_vm3, %v1053_v12 }
0x1881   :  { %1056 = vst.msk [vmem:[#allocation2 + $0x8] sm:$0xff] %vm275_vm3, %v1054_v27 }
0x1882   :  { %1311 = shalt.err (!%p1308_p4)
}
0x1883   :  { %s1312_s3 = scalar_lea.hbm %s1594_s8, 256 }
0x1884   :  { %p1313_p5 = scmp.ne.s32.totalorder %s1594_s8, %s1312_s3  ;;  %p1316_p6 = scmp.lt.u32.totalorder %s1312_s3, %s1594_s8 }
0x1886   :  { %p1318_p7 = pnand %p1316_p6, %p1313_p5 }
0x1888   :  { %1321 = shalt.err (!%p1318_p7)
}
0x1889   :  { %s1331_s16 = smov 128   ;;  %s1332_s17 = smov 8  }
0x188a   :  { %1068 = dma.vmem_to_hbm [thread:$0]  %s1063_s7, 256, %s1594_s8, [#allocation3], %s1331_s16, %s1331_s16, %s1332_s17  }
0x188b   :  { %1322 = dma.done.wait [#allocation3], 256  }
0x188c   :  { %1323 = vsyncadd [#allocation3], 4294967040 }
0x188d   :  { %1072 = vsyncpa [#allocation3], 1 }

</bundles_post_ra>
